<compile_context>
chip_gen: v7x
topology: tpu7x:2x2x1
jax: 0.10.0
libtpu: 0.0.40
codegen_flags: <defaults>
</compile_context>

<pallas_src>
import jax
import jax.numpy as jnp
from jax import lax
from jax.experimental import pallas as pl
from jax.experimental.pallas import tpu as pltpu

# ---------------- model dimensions (small, TPU-tile aligned) ----------------
B = 2      # batch (sentences)
S = 8      # sequence length
D = 32     # hidden size
V = 128    # vocab size
M = B * S  # total tokens (single block, no grid tiling needed)
# TODO(synk): for many sentences / decode steps, grow M (>=256) and add an
# M-tile grid axis (parallel) so v7x's second TensorCore splits the batch.


# ---------------------------------------------------------------------------
# Fused kernel: embedding gather + LM head + argmax + control-decoder score
# ---------------------------------------------------------------------------
def fused_forward_kernel(ids_ref, embed_ref, w_lm_ref, bcd_ref,
                         logits_ref, aux_ref):
    # ids_ref:    (M, 1)  int32     token ids
    # embed_ref:  (V, D)  bfloat16  embedding table
    # w_lm_ref:   (D, V)  bfloat16  LM head weight
    # bcd_ref:    (2, V)  float32   row 0 = LM bias, row 1 = control-dec weight
    # logits_ref: (M, V)  float32
    # aux_ref:    (2, V)  float32   row 0 lanes 0..M-1 = argmax ids (as f32),
    #                               row 1 = score (already doubled & /M)

    ids = ids_ref[...]                                          # (M, 1)
    vocab_iota = lax.broadcasted_iota(jnp.int32, (M, V), 1)     # lane index
    row_iota = lax.broadcasted_iota(jnp.int32, (M, V), 0)       # row index

    # ---- embedding gather as an in-kernel bf16 one-hot MXU matmul (exact)
    onehot = (vocab_iota == ids).astype(jnp.bfloat16)           # (M, V)
    x = jnp.dot(onehot, embed_ref[...],
                preferred_element_type=jnp.float32)             # (M, D) f32

    # ---- LM head: bf16 MXU matmul, f32 accumulation, f32 bias add
    bcd = bcd_ref[...]                                          # (2, V)
    bias = bcd[0:1, :]                                          # (1, V)
    w_cd = bcd[1:2, :]                                          # (1, V)
    logits = jnp.dot(x.astype(jnp.bfloat16), w_lm_ref[...],
                     preferred_element_type=jnp.float32) + bias
    logits_ref[...] = logits

    # ---- argmax over vocab, first-max-wins (torch.argmax tie-breaking)
    max_val = jnp.max(logits, axis=-1, keepdims=True)           # (M, 1)
    amax_col = jnp.min(jnp.where(logits >= max_val, vocab_iota, jnp.int32(V)),
                       axis=-1, keepdims=True).astype(jnp.float32)  # (M, 1)
    # scatter (M,1) column into a lane-dense (1,V) row: lane i <- amax[i]
    amax_row = jnp.sum(jnp.where(vocab_iota == row_iota, amax_col, 0.0),
                       axis=0, keepdims=True)                   # (1, V)

    # ---- control decoder: mean over tokens of (logits . w_cd), with the
    #      host-side doubling (score += score) and the 1/M folded in.
    weighted = logits * w_cd                                    # (M, V)
    total = jnp.sum(jnp.sum(weighted, axis=-1, keepdims=True),
                    axis=0, keepdims=True)                      # (1, 1)
    score_row = jnp.broadcast_to(total * jnp.float32(2.0 / M), (1, V))

    aux_ref[...] = jnp.concatenate([amax_row, score_row], axis=0)  # (2, V)


def fused_forward_pallas(token_ids, params):
    """token_ids [B,S] int32 -> (logits [M,V] f32, aux [2,V] f32)."""
    ids = token_ids.reshape(M, 1).astype(jnp.int32)

    flops = 2 * M * V * D + 2 * M * D * V + 10 * M * V
    bytes_accessed = (ids.size * 4
                      + params["embed"].size * 2
                      + params["w_lm"].size * 2
                      + params["bias_cd"].size * 4
                      + M * V * 4 + 2 * V * 4)

    return pl.pallas_call(
        fused_forward_kernel,
        out_shape=(
            jax.ShapeDtypeStruct((M, V), jnp.float32),   # logits
            jax.ShapeDtypeStruct((2, V), jnp.float32),   # packed argmax + score
        ),
        grid_spec=pl.GridSpec(
            grid=(1,),                                   # single block: no tiling
            in_specs=[
                pl.BlockSpec((M, 1), lambda i: (0, 0)),
                pl.BlockSpec((V, D), lambda i: (0, 0)),
                pl.BlockSpec((D, V), lambda i: (0, 0)),
                pl.BlockSpec((2, V), lambda i: (0, 0)),
            ],
            out_specs=[
                pl.BlockSpec((M, V), lambda i: (0, 0)),
                pl.BlockSpec((2, V), lambda i: (0, 0)),
            ],
        ),
        compiler_params=pltpu.CompilerParams(
            dimension_semantics=("parallel",)),
        cost_estimate=pl.CostEstimate(flops=flops, transcendentals=0,
                                      bytes_accessed=bytes_accessed),
    )(ids, params["embed"], params["w_lm"], params["bias_cd"])


# ---------------------------------------------------------------------------
# whole_model.forward equivalent
# ---------------------------------------------------------------------------
def whole_model_forward(token_ids, params, logits_out=None):
    if logits_out is None:
        logits_out = []

    # TODO(synk): tokenizer(input) string -> ids has no tensor equivalent;
    # the caller passes pre-tokenized `token_ids` directly.
    logits_flat, aux = fused_forward_pallas(token_ids, params)

    logits = logits_flat.reshape(B, S, V)
    logits_out.append(logits)
    c = aux[0, :M].astype(jnp.int32).reshape(B, S)   # argmax ids (exact: <2^24)

    # TODO(synk): tokenizer.decode(seq) string concatenation (juzi_out) and
    # mistke_juzi bookkeeping have no Pallas/JAX equivalent; argmax ids `c`
    # are returned instead.

    # In the reference, `if output == '.' or '。'` is always truthy, so the
    # control decoder always runs; its score (including the `score += score`
    # doubling and the mean over tokens) is produced inside the fused kernel.
    score = aux[1, 0]
    return c, score, logits


# ---------------------------------------------------------------------------
def init_params(key):
    k1, k2, k3, k4 = jax.random.split(key, 4)
    bias = jax.random.normal(k3, (1, V), jnp.float32) * 0.01
    w_cd = jax.random.normal(k4, (1, V), jnp.float32) * 0.02
    return {
        "embed": (jax.random.normal(k1, (V, D), jnp.float32) * 0.02
                  ).astype(jnp.bfloat16),
        "w_lm":  (jax.random.normal(k2, (D, V), jnp.float32) * 0.02
                  ).astype(jnp.bfloat16),
        # row 0 = LM-head bias, row 1 = control-decoder weight (one input DMA)
        "bias_cd": jnp.concatenate([bias, w_cd], axis=0),        # (2, V) f32
    }


if __name__ == "__main__":
    key = jax.random.PRNGKey(0)
    pkey, ikey = jax.random.split(key)
    params = init_params(pkey)
    token_ids = jax.random.randint(ikey, (B, S), 0, V, dtype=jnp.int32)

    c, score, logits = jax.jit(whole_model_forward)(token_ids, params)
    jax.block_until_ready((c, score, logits))

    # shape / dtype contract
    assert c.shape == (B, S) and c.dtype == jnp.int32
    assert score.shape == () and score.dtype == jnp.float32
    assert logits.shape == (B, S, V) and logits.dtype == jnp.float32

    # self-consistency: in-kernel argmax and score vs. the kernel's own logits
    c_ref = jnp.argmax(logits, axis=-1).astype(jnp.int32)
    assert bool(jnp.all(c == c_ref))
    score_ref = 2.0 * jnp.mean(logits.reshape(-1, V) @ params["bias_cd"][1])
    assert bool(jnp.allclose(score, score_ref, rtol=1e-4, atol=1e-5))

    print("KERNEL_OK")
</pallas_src>

<mosaic_0001>
module attributes {stable_mosaic.version = 11 : i64} {
  func.func @fused_forward_kernel(%arg0: i32, %arg1: memref<16x1xi32, #tpu.memory_space<vmem>>, %arg2: memref<128x32xbf16, #tpu.memory_space<vmem>>, %arg3: memref<32x128xbf16, #tpu.memory_space<vmem>>, %arg4: memref<2x128xf32, #tpu.memory_space<vmem>>, %arg5: memref<16x128xf32, #tpu.memory_space<vmem>>, %arg6: memref<2x128xf32, #tpu.memory_space<vmem>>) attributes {dimension_semantics = [#tpu.dimension_semantics<parallel>], iteration_bounds = array<i64: 1>, scalar_prefetch = 0 : i64, scratch_operands = 0 : i64, tpu.core_type = #tpu.core_type<tc>, window_params = [{pipeline_mode = #tpu.pipeline_mode<synchronous>, transform_indices = @transform_0, window_bounds = array<i64: 16, 1>}, {pipeline_mode = #tpu.pipeline_mode<synchronous>, transform_indices = @transform_1, window_bounds = array<i64: 128, 32>}, {pipeline_mode = #tpu.pipeline_mode<synchronous>, transform_indices = @transform_2, window_bounds = array<i64: 32, 128>}, {pipeline_mode = #tpu.pipeline_mode<synchronous>, transform_indices = @transform_3, window_bounds = array<i64: 2, 128>}, {pipeline_mode = #tpu.pipeline_mode<synchronous>, transform_indices = @transform_4, window_bounds = array<i64: 16, 128>}, {pipeline_mode = #tpu.pipeline_mode<synchronous>, transform_indices = @transform_5, window_bounds = array<i64: 2, 128>}]} {
    %c0 = arith.constant 0 : index
    %c0_0 = arith.constant 0 : index
    %0 = vector.load %arg1[%c0, %c0_0] : memref<16x1xi32, #tpu.memory_space<vmem>>, vector<16x1xi32>
    %1 = tpu.iota {dimensions = array<i32: 1>} : vector<16x128xi32>
    %2 = tpu.iota {dimensions = array<i32: 0>} : vector<16x128xi32>
    %3 = vector.broadcast %0 : vector<16x1xi32> to vector<16x128xi32>
    %4 = arith.cmpi eq, %1, %3 : vector<16x128xi32>
    %5 = arith.extui %4 : vector<16x128xi1> to vector<16x128xi32>
    %6 = arith.sitofp %5 : vector<16x128xi32> to vector<16x128xf32>
    %7 = arith.truncf %6 : vector<16x128xf32> to vector<16x128xbf16>
    %c0_1 = arith.constant 0 : index
    %c0_2 = arith.constant 0 : index
    %8 = vector.load %arg2[%c0_1, %c0_2] : memref<128x32xbf16, #tpu.memory_space<vmem>>, vector<128x32xbf16>
    %cst = arith.constant dense<0.000000e+00> : vector<16x32xf32>
    %9 = tpu.matmul %7, %8, %cst {dimension_numbers = #tpu.dot_dimension_numbers<[1], [0], [0], [1], [0, 0, 1, 1], [], []>} : vector<16x128xbf16>, vector<128x32xbf16>, vector<16x32xf32> -> vector<16x32xf32>
    %c0_3 = arith.constant 0 : index
    %c0_4 = arith.constant 0 : index
    %10 = vector.load %arg4[%c0_3, %c0_4] : memref<2x128xf32, #tpu.memory_space<vmem>>, vector<2x128xf32>
    %11 = vector.extract_strided_slice %10 {offsets = [0, 0], sizes = [1, 128], strides = [1, 1]} : vector<2x128xf32> to vector<1x128xf32>
    %12 = vector.extract_strided_slice %10 {offsets = [1, 0], sizes = [1, 128], strides = [1, 1]} : vector<2x128xf32> to vector<1x128xf32>
    %13 = arith.truncf %9 : vector<16x32xf32> to vector<16x32xbf16>
    %c0_5 = arith.constant 0 : index
    %c0_6 = arith.constant 0 : index
    %14 = vector.load %arg3[%c0_5, %c0_6] : memref<32x128xbf16, #tpu.memory_space<vmem>>, vector<32x128xbf16>
    %cst_7 = arith.constant dense<0.000000e+00> : vector<16x128xf32>
    %15 = tpu.matmul %13, %14, %cst_7 {dimension_numbers = #tpu.dot_dimension_numbers<[1], [0], [0], [1], [0, 0, 1, 1], [], []>} : vector<16x32xbf16>, vector<32x128xbf16>, vector<16x128xf32> -> vector<16x128xf32>
    %16 = vector.broadcast %11 : vector<1x128xf32> to vector<16x128xf32>
    %17 = arith.addf %15, %16 : vector<16x128xf32>
    %c0_8 = arith.constant 0 : index
    %c0_9 = arith.constant 0 : index
    %18 = vector.load %arg5[%c0_8, %c0_9] : memref<16x128xf32, #tpu.memory_space<vmem>>, vector<16x128xf32>
    tpu.vector_store %arg5[%c0_8, %c0_9], %17 {strides = array<i32>} : memref<16x128xf32, #tpu.memory_space<vmem>>, vector<16x128xf32>,
    %cst_10 = arith.constant dense<0xFF800000> : vector<16xf32>
    %19 = vector.multi_reduction <maximumf>, %17, %cst_10 [1] : vector<16x128xf32> to vector<16xf32>
    %20 = vector.shape_cast %19 : vector<16xf32> to vector<16x1xf32>
    %21 = vector.broadcast %20 : vector<16x1xf32> to vector<16x128xf32>
    %22 = arith.cmpf oge, %17, %21 : vector<16x128xf32>
    %c128_i32 = arith.constant 128 : i32
    %23 = vector.broadcast %c128_i32 : i32 to vector<16x128xi32>
    %24 = arith.select %22, %1, %23 : vector<16x128xi1>, vector<16x128xi32>
    %cst_11 = arith.constant dense<2147483647> : vector<16xi32>
    %25 = vector.multi_reduction <minsi>, %24, %cst_11 [1] : vector<16x128xi32> to vector<16xi32>
    %26 = vector.shape_cast %25 : vector<16xi32> to vector<16x1xi32>
    %27 = arith.sitofp %26 : vector<16x1xi32> to vector<16x1xf32>
    %28 = arith.cmpi eq, %1, %2 : vector<16x128xi32>
    %cst_12 = arith.constant 0.000000e+00 : f32
    %29 = vector.shape_cast %27 : vector<16x1xf32> to vector<16x1xf32>
    %30 = vector.broadcast %29 : vector<16x1xf32> to vector<16x128xf32>
    %31 = vector.broadcast %cst_12 : f32 to vector<16x128xf32>
    %32 = arith.select %28, %30, %31 : vector<16x128xi1>, vector<16x128xf32>
    %cst_13 = arith.constant dense<0.000000e+00> : vector<128xf32>
    %33 = vector.multi_reduction <add>, %32, %cst_13 [0] : vector<16x128xf32> to vector<128xf32>
    %34 = vector.shape_cast %33 : vector<128xf32> to vector<1x128xf32>
    %35 = vector.broadcast %12 : vector<1x128xf32> to vector<16x128xf32>
    %36 = arith.mulf %17, %35 : vector<16x128xf32>
    %cst_14 = arith.constant dense<0.000000e+00> : vector<16xf32>
    %37 = vector.multi_reduction <add>, %36, %cst_14 [1] : vector<16x128xf32> to vector<16xf32>
    %38 = vector.shape_cast %37 : vector<16xf32> to vector<16x1xf32>
    %cst_15 = arith.constant dense<0.000000e+00> : vector<1xf32>
    %39 = vector.multi_reduction <add>, %38, %cst_15 [0] : vector<16x1xf32> to vector<1xf32>
    %40 = vector.shape_cast %39 : vector<1xf32> to vector<1x1xf32>
    %cst_16 = arith.constant 1.250000e-01 : f32
    %41 = vector.broadcast %cst_16 : f32 to vector<1x1xf32>
    %42 = arith.mulf %40, %41 : vector<1x1xf32>
    %43 = vector.shape_cast %42 : vector<1x1xf32> to vector<1x1xf32>
    %44 = vector.broadcast %43 : vector<1x1xf32> to vector<1x128xf32>
    %45 = tpu.concatenate %34, %44 in 0 : vector<1x128xf32>, vector<1x128xf32> -> vector<2x128xf32>
    %c0_17 = arith.constant 0 : index
    %c0_18 = arith.constant 0 : index
    %46 = vector.load %arg6[%c0_17, %c0_18] : memref<2x128xf32, #tpu.memory_space<vmem>>, vector<2x128xf32>
    tpu.vector_store %arg6[%c0_17, %c0_18], %45 {strides = array<i32>} : memref<2x128xf32, #tpu.memory_space<vmem>>, vector<2x128xf32>,
    return
  }
  func.func @transform_0(%arg0: i32) -> (i32, i32) {
    %c0_i32 = arith.constant 0 : i32
    %c0_i32_0 = arith.constant 0 : i32
    %c0_i32_1 = arith.constant 0 : i32
    return %c0_i32, %c0_i32_0 : i32, i32
  }
  func.func @transform_1(%arg0: i32) -> (i32, i32) {
    %c0_i32 = arith.constant 0 : i32
    %c0_i32_0 = arith.constant 0 : i32
    %c0_i32_1 = arith.constant 0 : i32
    return %c0_i32, %c0_i32_0 : i32, i32
  }
  func.func @transform_2(%arg0: i32) -> (i32, i32) {
    %c0_i32 = arith.constant 0 : i32
    %c0_i32_0 = arith.constant 0 : i32
    %c0_i32_1 = arith.constant 0 : i32
    return %c0_i32, %c0_i32_0 : i32, i32
  }
  func.func @transform_3(%arg0: i32) -> (i32, i32) {
    %c0_i32 = arith.constant 0 : i32
    %c0_i32_0 = arith.constant 0 : i32
    %c0_i32_1 = arith.constant 0 : i32
    return %c0_i32, %c0_i32_0 : i32, i32
  }
  func.func @transform_4(%arg0: i32) -> (i32, i32) {
    %c0_i32 = arith.constant 0 : i32
    %c0_i32_0 = arith.constant 0 : i32
    %c0_i32_1 = arith.constant 0 : i32
    return %c0_i32, %c0_i32_0 : i32, i32
  }
  func.func @transform_5(%arg0: i32) -> (i32, i32) {
    %c0_i32 = arith.constant 0 : i32
    %c0_i32_0 = arith.constant 0 : i32
    %c0_i32_1 = arith.constant 0 : i32
    return %c0_i32, %c0_i32_0 : i32, i32
  }
}

</mosaic_0001>

<bundles_post_ra>
// kernel: whole_model_forward.1
= control target key start
LH: loop header
LB: loop body
LE: loop exit
PB: predicated region body
PF: predicated region fallthrough
CT: control target
= control target key end

     0   :  { %v402_v1 = vmov 0   ;;  %v403_v2 = vmov 0.0   ;;  %vm404_vm0 = vmmov 0   ;;  %s507_s0 = inlined_call_operand.vmem [shape: s32[16,1], index: 0, kind: input, shape index: {}]   ;;  %s508_s1 = inlined_call_operand.vmem [shape: bf16[128,32], index: 1, kind: input, shape index: {}]   ;;  %s509_s2 = inlined_call_operand.vmem [shape: bf16[32,128], index: 2, kind: input, shape index: {}]   ;;  %s510_s3 = inlined_call_operand.vmem [shape: f32[2,128], index: 3, kind: input, shape index: {}]   ;;  %s511_s4 = inlined_call_operand.hbm [shape: f32[16,128], index: 4, kind: output, shape index: {0}]   ;;  %s512_s5 = inlined_call_operand.vmem [shape: f32[2,128], index: 5, kind: output, shape index: {1}]  }
   0x1   :  { %v21_v0 = vld [vmem:[%s507_s0] sm:$0xff]  ;;  %367 = vset.pattern.permute.xlu0 %v402_v1  ;;  %332 = vmatprep.subr.bf16.mxu0 %v403_v2  ;;  %v22_v4 = vld [vmem:[%s507_s0 + $0x8] sm:$0xff]  ;;  %v370_v6 = vld [vmem:[%s508_s1 + $0x10] sm:$0xff]  }
   0x2   :  { %v368_v3 = vld [vmem:[%s508_s1] sm:$0xff]   ;;  %29 = vperm.xlu0 %367, %v21_v0   ;;  %352 = vmatprep.subr.bf16.mxu1 %v403_v2  ;;  %v369_v5 = vld [vmem:[%s508_s1 + $0x8] sm:$0xff]  }
   0x3   :  { %333 = vmatpush3.bf16.msra.mxu0 %v368_v3  ;;  %348 = vmatprep.mubr.msk.bf16.mxu0 %vm404_vm0, %v403_v2  ;;  %v376_v7 = vld [vmem:[%s509_s2] sm:$0xff]  }
   0x4   :  { %334 = vmatprep.subr.bf16.mxu0 %v403_v2  ;;  %356 = vmatprep.mubr.msk.bf16.mxu1 %vm404_vm0, %v403_v2 }
   0x5   :  { %353 = vmatpush3.bf16.msra.mxu1 %v376_v7 }
   0x6   :  { %32 = vperm.xlu0 %367, %v22_v4  }
   0x7   :  { %335 = vmatpush3.bf16.msra.mxu0 %v369_v5 }
   0x8   :  { %336 = vmatprep.subr.bf16.mxu0 %v403_v2 }
   0x9   :  { %11 = vsyncpa [#allocation3], 0  ;;  %v371_v8 = vld [vmem:[%s508_s1 + $0x18] sm:$0xff]   ;;  %354 = vmatprep.subr.bf16.mxu1 %v403_v2  ;;  %v372_v9 = vld [vmem:[%s508_s1 + $0x20] sm:$0xff]   ;;  %v23_v13 = vlaneseq  ;;  %v405_v17 = vmov 1.0|1.0  }
   0xa   :  { %v373_v10 = vld [vmem:[%s508_s1 + $0x28] sm:$0xff]   ;;  %v374_v11 = vld [vmem:[%s508_s1 + $0x30] sm:$0xff]   ;;  %v375_v12 = vld [vmem:[%s508_s1 + $0x38] sm:$0xff]   ;;  %vm168_vm4 = vcmask 261120  }
   0xb   :  { %337 = vmatpush3.bf16.msra.mxu0 %v370_v6  ;;  %v472_v15 = vand.u32 127, %v23_v13  ;;  %v377_v18 = vld [vmem:[%s509_s2 + $0x8] sm:$0xff]   ;;  %v479_v24 = vshrl.u32 %v23_v13, 7  ;;  %v146_v26 = vld [vmem:[%s510_s3] sm:$0x3]  ;;  %s406_s2 = smov [#allocation2]  }
   0xc   :  { %338 = vmatprep.subr.bf16.mxu0 %v403_v2  ;;  %355 = vmatpush3.bf16.msra.mxu1 %v377_v18  ;;  %s290_s3 = sshll.u32 %s406_s2, 4  ;;  %s291_s3 = int_to_ptr.vmem [resolvable:$true] %s290_s3 }
   0xd   :  { %v154_v25 = vsub.s32 0, %v479_v24  ;;  %v266_v46 = vsub.s32 1, %v479_v24  ;;  %s378_s17 = scalar_lea.vmem %s291_s3, 256  ;;  %p383_p1 = scmp.lt.s32.totalorder %s291_s3, %s291_s3 }
   0xe   :  { %p379_p0 = scmp.ne.s32.totalorder %s291_s3, %s378_s17  ;;  %p384_p2 = scmp.lt.s32.totalorder %s378_s17, %s378_s17 }
   0xf   :  { %339 = vmatpush3.bf16.msra.mxu0 %v371_v8  ;;  %v155_v27 = vrot.slane %v146_v26, %v154_v25  ;;  %v267_v50 = vrot.slane %v146_v26, %v266_v46 }
  0x10   :  { %340 = vmatprep.subr.bf16.mxu0 %v403_v2  ;;  %p385_p3 = por %p384_p2, %p383_p1 }
  0x12   :  { %p386_p4 = pnand %p385_p3, %p379_p0 }
  0x13   :  { %341 = vmatpush3.bf16.msra.mxu0 %v372_v9 }
  0x14   :  { %342 = vmatprep.subr.bf16.mxu0 %v403_v2 }
  0x17   :  { %343 = vmatpush3.bf16.msra.mxu0 %v373_v10 }
  0x18   :  { %344 = vmatprep.subr.bf16.mxu0 %v403_v2 }
  0x1b   :  { %345 = vmatpush3.bf16.msra.mxu0 %v374_v11 }
  0x1c   :  { %346 = vmatprep.subr.bf16.mxu0 %v403_v2 }
  0x1f   :  { %347 = vmatpush3.bf16.msra.mxu0 %v375_v12 }
  0x81   :  { %v30_v14 = vpop.permute.xlu0 %29 }
  0x82   :  { %vm34_vm1 = vcmp.eq.s32.totalorder %v472_v15, %v30_v14 }
  0x85   :  { %v33_v16 = vpop.permute.xlu0 %32 }
  0x86   :  { %vm35_vm2 = vcmp.eq.s32.totalorder %v472_v15, %v33_v16 }
  0x87   :  { %vm315_vm3 = vmpackc.low %vm35_vm2, %vm34_vm1 }
  0x88   :  { %349 = vmatmul.mubr.msk.bf16.vlgmr.msra.gmra.mrb[0].mxu0 %vm315_vm3, %v405_v17 }
 0x15b   :  { %v139_v19 = vpop.f32.mrb[0].mxu0 }
 0x15c   :  { %v350_v20 = vpop.f32.mrb[1].mxu0 }
 0x15d   :  { %v142_v21 = vpop.f32.mrb[2].mxu0 }
 0x15e   :  { %v147_v22 = vpack.c.bf16 %v142_v21, %v139_v19  ;;  %v351_v23 = vpop.f32.mrb[3].mxu0 }
 0x160   :  { %357 = vmatmul.mubr.msk.bf16.vlgmr.msra.gmra.mrb[0].mxu1 %vm168_vm4, %v147_v22 }
 0x233   :  { %v206_v28 = vpop.f32.mrb[0].mxu1 }
 0x234   :  { %v207_v29 = vadd.f32 %v206_v28, %v155_v27  ;;  %v358_v30 = vpop.f32.mrb[1].mxu1 }
 0x235   :  { %v209_v31 = vpop.f32.mrb[2].mxu1 }
 0x236   :  { %213 = vst [vmem:[#allocation2] sm:$0xff] %v207_v29  ;;  %v210_v32 = vadd.f32 %v209_v31, %v155_v27  ;;  %215 = vmax.xlane.f32.xlu1 %v207_v29  ;;  %v359_v33 = vpop.f32.mrb[3].mxu1  ;;  %v268_v52 = vmul.f32 %v267_v50, %v207_v29 }
 0x238   :  { %214 = vst [vmem:[#allocation2 + $0x8] sm:$0xff] %v210_v32  ;;  %v269_v53 = vmul.f32 %v267_v50, %v210_v32 }
 0x23a   :  { %217 = vmax.xlane.f32.xlu1 %v210_v32 }
 0x2c3   :  { %v216_v34 = vpop.xlane.xlu1 %215 }
 0x2c4   :  { %vm219_vm5 = vcmp.ge.f32.partialorder %v207_v29, %v216_v34 }
 0x2c5   :  { %v221_v35 = vsel %vm219_vm5, %v472_v15, 128 }
 0x2c6   :  { %v224_v36 = vshra.s32 %v221_v35, 16  ;;  %v223_v42 = vand.u32 65535, %v221_v35 }
 0x2c7   :  { %v218_v37 = vpop.xlane.xlu1 %217 }
 0x2c8   :  { %vm220_vm6 = vcmp.ge.f32.partialorder %v210_v32, %v218_v37  ;;  %v226_v38 = vcvt.s32.f32 %v224_v36  ;;  %v225_v45 = vcvt.s32.f32 %v223_v42 }
 0x2c9   :  { %v222_v39 = vsel %vm220_vm6, %v472_v15, 128 }
 0x2ca   :  { %227 = vmin.xlane.f32.xlu0 %v226_v38  ;;  %v238_v40 = vshra.s32 %v222_v39, 16  ;;  %v237_v43 = vand.u32 65535, %v222_v39 }
 0x2cc   :  { %v240_v41 = vcvt.s32.f32 %v238_v40  ;;  %v239_v49 = vcvt.s32.f32 %v237_v43 }
 0x2ce   :  { %241 = vmin.xlane.f32.xlu1 %v240_v41 }
 0x357   :  { %v228_v44 = vpop.xlane.xlu0 %227 }
 0x358   :  { %vm229_vm7 = vcmp.eq.f32.partialorder %v226_v38, %v228_v44 }
 0x359   :  { %v230_v47 = vsel %vm229_vm7, %v225_v45, inf }
 0x35a   :  { %231 = vmin.xlane.f32.xlu1 %v230_v47 }
 0x35b   :  { %v242_v48 = vpop.xlane.xlu1 %241 }
 0x35c   :  { %vm243_vm8 = vcmp.eq.f32.partialorder %v240_v41, %v242_v48 }
 0x35d   :  { %v244_v51 = vsel %vm243_vm8, %v239_v49, inf }
 0x35e   :  { %245 = vmin.xlane.f32.xlu1 %v244_v51 }
 0x362   :  { %270 = vadd.xlane.f32.xlu1 %v268_v52 }
 0x366   :  { %272 = vadd.xlane.f32.xlu1 %v269_v53 }
 0x367   :  { %389 = shalt.err (!%p386_p4)
}
 0x368   :  { %s390_s20 = scalar_lea.hbm %s511_s4, 256 }
 0x369   :  { %p391_p5 = scmp.ne.s32.totalorder %s511_s4, %s390_s20  ;;  %p394_p6 = scmp.lt.u32.totalorder %s390_s20, %s511_s4 }
 0x36b   :  { %p396_p7 = pnand %p394_p6, %p391_p5 }
 0x36d   :  { %399 = shalt.err (!%p396_p7)
}
 0x36e   :  { %s407_s25 = smov 128   ;;  %s408_s26 = smov 8   ;;  %v234_v54 = vcvt.f32.s32 %v228_v44  ;;  %v248_v57 = vcvt.f32.s32 %v242_v48  ;;  %v27_v60 = vadd.s32 8, %v479_v24  ;;  %vm253_vm9 = vcmp.eq.s32.totalorder %v472_v15, %v479_v24 }
 0x36f   :  { %296 = dma.vmem_to_hbm [thread:$0]  %s291_s3, 256, %s511_s4, [#allocation3], %s407_s25, %s407_s25, %s408_s26   ;;  %vm282_vm11 = vcmask 1040384  }
 0x370   :  { %v235_v56 = vshll.u32 %v234_v54, 16  ;;  %v249_v62 = vshll.u32 %v248_v57, 16  ;;  %vm254_vm10 = vcmp.eq.s32.totalorder %v472_v15, %v27_v60 }
 0x3e7   :  { %v232_v55 = vpop.xlane.xlu1 %231 }
 0x3e8   :  { %v233_v58 = vcvt.f32.s32 %v232_v55 }
 0x3ea   :  { %v236_v59 = vadd.s32 %v235_v56, %v233_v58 }
 0x3eb   :  { %v246_v61 = vpop.xlane.xlu1 %245 }
 0x3ec   :  { %v247_v63 = vcvt.f32.s32 %v246_v61  ;;  %v251_v0 = vcvt.s32.f32 %v236_v59 }
 0x3ee   :  { %v250_v1 = vadd.s32 %v249_v62, %v247_v63  ;;  %v255_v4 = vsel %vm253_vm9, %v251_v0, 0.0 }
 0x3ef   :  { %v271_v2 = vpop.xlane.xlu1 %270 }
 0x3f0   :  { %v252_v3 = vcvt.s32.f32 %v250_v1 }
 0x3f2   :  { %v256_v5 = vsel %vm254_vm10, %v252_v3, 0.0 }
 0x3f3   :  { %v257_v6 = vadd.f32 %v256_v5, %v255_v4  ;;  %v273_v7 = vpop.xlane.xlu1 %272 }
 0x3f4   :  { %v274_v8 = vadd.f32 %v273_v7, %v271_v2 }
 0x3f5   :  { %v258_v9 = vrot.slane %v257_v6, 4 }
 0x3f6   :  { %v275_v10 = vrot.slane %v274_v8, 4 }
 0x3f7   :  { %v259_v11 = vadd.f32 %v258_v9, %v257_v6 }
 0x3f8   :  { %v276_v12 = vadd.f32 %v275_v10, %v274_v8 }
 0x3f9   :  { %v260_v13 = vrot.slane %v259_v11, 2 }
 0x3fa   :  { %v277_v14 = vrot.slane %v276_v12, 2 }
 0x3fb   :  { %v261_v16 = vadd.f32 %v260_v13, %v259_v11 }
 0x3fc   :  { %v278_v17 = vadd.f32 %v277_v14, %v276_v12 }
 0x3fd   :  { %v262_v18 = vrot.slane %v261_v16, 1 }
 0x3fe   :  { %v279_v19 = vrot.slane %v278_v17, 1 }
 0x3ff   :  { %v263_v15 = vadd.f32 %v262_v18, %v261_v16 }
 0x400   :  { %v280_v20 = vadd.f32 %v279_v19, %v278_v17 }
 0x402   :  { %v281_v21 = vmul.f32 0.125, %v280_v20 }
 0x404   :  { %v283_v22 = vsel %vm282_vm11, %v263_v15, %v281_v21 }
 0x405   :  { %284 = vst [vmem:[%s512_s5] sm:$0x3] %v283_v22 }
 0x406   :  { %400 = dma.done.wait [#allocation3], 256  }
 0x407   :  { %401 = vsyncadd [#allocation3], 4294967040 }
 0x408   :  { %304 = vsyncpa [#allocation3], 1 }

</bundles_post_ra>
